<compile_context>
chip_gen: v7x
topology: tpu7x:2x2x1
jax: 0.10.0
libtpu: 0.0.40
codegen_flags: <defaults>
</compile_context>

<pallas_src>
import numpy as np
import jax
import jax.numpy as jnp
from jax.experimental import pallas as pl
from jax.experimental.pallas import tpu as pltpu

NUM_CLASSES = 10
OUT_PAD = 128                            # lane-dense output width (10 real classes)
VMEM_BUDGET_BYTES = 28 * 1024 * 1024     # conservative: fits v7x 32 MiB scoped default
MAX_BATCH_TILE = 4096


def _round_up(x: int, m: int) -> int:
    return (x + m - 1) // m * m


def precompute_adjacency_images(img_size: int) -> np.ndarray:
    """Replicates BorisGraphNet.precompute_adjacency_images without networkx/scipy."""
    N = img_size * img_size
    A = np.zeros((N, N), dtype=np.float64)
    idx = lambda i, j: i * img_size + j
    for i in range(img_size):
        for j in range(img_size):
            u = idx(i, j)
            if i + 1 < img_size:
                v = idx(i + 1, j)
                A[u, v] = 1.0
                A[v, u] = 1.0
            if j + 1 < img_size:
                v = idx(i, j + 1)
                A[u, v] = 1.0
                A[v, u] = 1.0
    A = A + np.eye(N)
    D1 = A.sum(axis=0) ** 0.01           # column sums
    D2 = A.sum(axis=1) ** 0.01           # row sums
    A = A * D1[None, :]                  # A @ diag(D1)
    A = D2[:, None] * A                  # diag(D2) @ A
    return A.astype(np.float32)


def fold_weights(A_hat, W) -> jax.Array:
    """One-time init: M_pad = zero_pad(A_hat.T @ W.T) -> (N, OUT_PAD), done in numpy
    so the per-call path never reads the N x N adjacency or re-runs the fold."""
    A_hat = np.asarray(A_hat, dtype=np.float32)
    W = np.asarray(W, dtype=np.float32)
    N = A_hat.shape[0]
    M = A_hat.T @ W.T                                     # (N, 10)
    M_pad = np.zeros((N, OUT_PAD), dtype=np.float32)
    M_pad[:, :NUM_CLASSES] = M
    return jnp.asarray(M_pad)


def _choose_batch_tile(B: int, N: int, elem_bytes: int) -> int:
    """VMEM budget: 2x X tile (double buffer) + 2x out tile + 1x folded weight."""
    row_bytes = 2 * N * elem_bytes + 2 * OUT_PAD * 4
    weight_bytes = N * OUT_PAD * elem_bytes
    max_rows = max(8, (VMEM_BUDGET_BYTES - weight_bytes) // row_bytes)
    max_rows = max(8, (max_rows // 8) * 8)
    if B <= 512:
        tb = _round_up(B, 8)                              # single tile for small batches
    else:
        # Keep >= 2 grid steps (v7x has 2 TensorCores) and cap the tile at 4096 rows.
        tb = min(MAX_BATCH_TILE, _round_up(pl.cdiv(B, 2), 8))
        tb = max(tb, 512)
    return min(tb, max_rows)


def boris_graphnet_kernel(x_ref, m_ref, o_ref):
    # out_tile = X_tile @ M_pad : one MXU matmul, f32 accumulate.
    o_ref[...] = jnp.dot(x_ref[...], m_ref[...],
                         preferred_element_type=jnp.float32).astype(o_ref.dtype)


def boris_graphnet_forward(x_nchw, M_pad, *, min_pallas_batch=0,
                           compute_dtype=jnp.float32):
    """x_nchw: (B, 1, H, W); M_pad: (N, OUT_PAD) folded weight. Returns (B, 10)."""
    B = x_nchw.shape[0]
    N = M_pad.shape[0]
    X = x_nchw.reshape(B, N).astype(compute_dtype)        # row-major, matches x.view(B, -1)
    M = M_pad.astype(compute_dtype)

    if B < min_pallas_batch:
        # Tiny batches: pallas_call launch/pipeline overhead dominates a <1us op.
        return jnp.dot(X, M[:, :NUM_CLASSES], preferred_element_type=jnp.float32)

    elem_bytes = np.dtype(compute_dtype).itemsize
    TB = _choose_batch_tile(B, N, elem_bytes)
    grid = (pl.cdiv(B, TB),)       # no batch-pad copy; Pallas masks the ragged last tile

    cost = pl.CostEstimate(
        flops=2 * B * N * OUT_PAD,
        transcendentals=0,
        bytes_accessed=B * N * elem_bytes + N * OUT_PAD * elem_bytes + B * OUT_PAD * 4,
    )

    out_pad = pl.pallas_call(
        boris_graphnet_kernel,
        out_shape=jax.ShapeDtypeStruct((B, OUT_PAD), jnp.float32),
        grid=grid,
        in_specs=[
            pl.BlockSpec((TB, N), lambda i: (i, 0)),                 # X tile (double-buffered)
            pl.BlockSpec((N, OUT_PAD), lambda i: (0, 0),
                         pipeline_mode=pl.Buffered(1)),              # constant weight: single buffer
        ],
        out_specs=pl.BlockSpec((TB, OUT_PAD), lambda i: (i, 0)),     # lane-dense 128-wide slab
        compiler_params=pltpu.CompilerParams(
            dimension_semantics=("parallel",),
        ),
        cost_estimate=cost,
    )(X, M)

    return out_pad[:, :NUM_CLASSES]


if __name__ == "__main__":
    img_size = 16                 # small, consistent with the module (N = img_size**2)
    N = img_size * img_size

    key = jax.random.PRNGKey(0)
    kx, kw, kx2 = jax.random.split(key, 3)

    # Deterministic synthetic parameters (fc: Linear(N, 10, bias=False)).
    bound = 1.0 / np.sqrt(N)
    W = jax.random.uniform(kw, (NUM_CLASSES, N), dtype=jnp.float32,
                           minval=-bound, maxval=bound)
    A_hat_np = precompute_adjacency_images(img_size)
    A_hat = jnp.asarray(A_hat_np)

    # One-time setup (hoisted out of the per-call path).
    M_pad = fold_weights(A_hat_np, np.asarray(W))

    fwd = jax.jit(boris_graphnet_forward,
                  static_argnames=("min_pallas_batch", "compute_dtype"))

    def reference(x):
        X = x.reshape(x.shape[0], N)
        avg = jnp.einsum("nm,bm->bn", A_hat, X)           # A_hat @ x_b per batch element
        return avg @ W.T

    # Case 1: tiny batch (B=2), forced through the Pallas kernel.
    x_small = jax.random.normal(kx, (2, 1, img_size, img_size), dtype=jnp.float32)
    out_small = jax.block_until_ready(fwd(x_small, M_pad, min_pallas_batch=0))
    np.testing.assert_allclose(np.asarray(out_small), np.asarray(reference(x_small)),
                               rtol=1e-4, atol=1e-4)
    assert out_small.shape == (2, NUM_CLASSES)

    # Case 2: larger ragged batch (B=1030) -> 2 parallel grid steps + masked last tile.
    x_big = jax.random.normal(kx2, (1030, 1, img_size, img_size), dtype=jnp.float32)
    out_big = jax.block_until_ready(fwd(x_big, M_pad, min_pallas_batch=0))
    np.testing.assert_allclose(np.asarray(out_big), np.asarray(reference(x_big)),
                               rtol=1e-4, atol=1e-4)
    assert out_big.shape == (1030, NUM_CLASSES)

    print("KERNEL_OK")
</pallas_src>

<mosaic_0001>
module attributes {stable_mosaic.version = 11 : i64} {
  func.func @boris_graphnet_kernel(%arg0: i32, %arg1: memref<8x256xf32, #tpu.memory_space<vmem>>, %arg2: memref<256x128xf32, #tpu.memory_space<vmem>>, %arg3: memref<8x128xf32, #tpu.memory_space<vmem>>) attributes {dimension_semantics = [#tpu.dimension_semantics<parallel>], iteration_bounds = array<i64: 1>, scalar_prefetch = 0 : i64, scratch_operands = 0 : i64, tpu.core_type = #tpu.core_type<tc>, window_params = [{transform_indices = @transform_0, window_bounds = array<i64: 8, 256>}, {pipeline_mode = #tpu.pipeline_mode<synchronous>, transform_indices = @transform_1, window_bounds = array<i64: 256, 128>}, {transform_indices = @transform_2, window_bounds = array<i64: 8, 128>}]} {
    %c0 = arith.constant 0 : index
    %c0_0 = arith.constant 0 : index
    %0 = vector.load %arg1[%c0, %c0_0] : memref<8x256xf32, #tpu.memory_space<vmem>>, vector<8x256xf32>
    %c0_1 = arith.constant 0 : index
    %c0_2 = arith.constant 0 : index
    %1 = vector.load %arg2[%c0_1, %c0_2] : memref<256x128xf32, #tpu.memory_space<vmem>>, vector<256x128xf32>
    %cst = arith.constant dense<0.000000e+00> : vector<8x128xf32>
    %2 = tpu.matmul %0, %1, %cst {dimension_numbers = #tpu.dot_dimension_numbers<[1], [0], [0], [1], [0, 0, 1, 1], [], []>} : vector<8x256xf32>, vector<256x128xf32>, vector<8x128xf32> -> vector<8x128xf32>
    %c0_3 = arith.constant 0 : index
    %c0_4 = arith.constant 0 : index
    %3 = vector.load %arg3[%c0_3, %c0_4] : memref<8x128xf32, #tpu.memory_space<vmem>>, vector<8x128xf32>
    tpu.vector_store %arg3[%c0_3, %c0_4], %2 {strides = array<i32>} : memref<8x128xf32, #tpu.memory_space<vmem>>, vector<8x128xf32>,
    return
  }
  func.func @transform_0(%arg0: i32) -> (i32, i32) {
    %c0_i32 = arith.constant 0 : i32
    %c0_i32_0 = arith.constant 0 : i32
    return %arg0, %c0_i32 : i32, i32
  }
  func.func @transform_1(%arg0: i32) -> (i32, i32) {
    %c0_i32 = arith.constant 0 : i32
    %c0_i32_0 = arith.constant 0 : i32
    %c0_i32_1 = arith.constant 0 : i32
    return %c0_i32, %c0_i32_0 : i32, i32
  }
  func.func @transform_2(%arg0: i32) -> (i32, i32) {
    %c0_i32 = arith.constant 0 : i32
    %c0_i32_0 = arith.constant 0 : i32
    return %arg0, %c0_i32 : i32, i32
  }
}

</mosaic_0001>

<bundles_post_ra>
// kernel: boris_graphnet_forward.1
= control target key start
LH: loop header
LB: loop body
LE: loop exit
PB: predicated region body
PF: predicated region fallthrough
CT: control target
= control target key end

     0   :  { %7 = vsyncpa [#allocation3], 0  ;;  %s351_s0 = inlined_call_operand.vmem [shape: f32[2,256], index: 0, kind: input, shape index: {}]   ;;  %s352_s1 = inlined_call_operand.hbm [shape: f32[256,128], index: 1, kind: input, shape index: {}]   ;;  %s353_s2 = inlined_call_operand.hbm [shape: f32[2,128], index: 2, kind: output, shape index: {}]  }
   0x1   :  { %8 = vsyncpa [#allocation4], 0  ;;  %s300_s9 = smov [#allocation2]   ;;  %s252_s13 = scalar_lea.hbm %s352_s1, 4096 }
   0x2   :  { %s16_s10 = sshll.u32 %s300_s9, 4  ;;  %p253_p0 = scmp.ne.s32.totalorder %s352_s1, %s252_s13  ;;  %s17_s10 = int_to_ptr.vmem [resolvable:$true] %s16_s10 }
   0x3   :  { %p256_p1 = scmp.lt.u32.totalorder %s252_s13, %s352_s1 }
   0x5   :  { %p258_p2 = pnand %p256_p1, %p253_p0 }
   0x7   :  { %261 = shalt.err (!%p258_p2)
}
   0x8   :  { %s262_s18 = scalar_lea.vmem %s17_s10, 4096  ;;  %p267_p4 = scmp.lt.s32.totalorder %s17_s10, %s17_s10 }
   0x9   :  { %p263_p3 = scmp.ne.s32.totalorder %s17_s10, %s262_s18  ;;  %p268_p5 = scmp.lt.s32.totalorder %s262_s18, %s262_s18 }
   0xb   :  { %p269_p6 = por %p268_p5, %p267_p4 }
   0xd   :  { %p270_p7 = pnand %p269_p6, %p263_p3 }
   0xf   :  { %273 = shalt.err (!%p270_p7)
}
  0x10   :  { %s301_s19 = smov 128   ;;  %s302_s20 = smov 8  }
  0x11   :  { %22 = dma.hbm_to_vmem [thread:$0]  %s352_s1, 4096, %s17_s10, [#allocation3], %s301_s19, %s301_s19, %s302_s20  }
  0x12   :  { %296 = dma.done.wait [#allocation3], 4096  }
  0x13   :  { %297 = vsyncadd [#allocation3], 4294963200  ;;  %v46_v0 = vld [vmem:[#allocation2 + $0x80] sm:$0xff]  ;;  %v47_v1 = vld [vmem:[#allocation2 + $0x88] sm:$0xff] }
  0x14   :  { %v30_v2 = vld [vmem:[#allocation2] sm:$0xff]  ;;  %v209_v3 = vpack.c.bf16 %v47_v1, %v46_v0  ;;  %v31_v4 = vld [vmem:[#allocation2 + $0x8] sm:$0xff]  ;;  %v48_v5 = vld [vmem:[#allocation2 + $0x90] sm:$0xff] }
  0x15   :  { %v49_v6 = vld [vmem:[#allocation2 + $0x98] sm:$0xff]  ;;  %v211_v7 = vpack.c.bf16 %v31_v4, %v30_v2  ;;  %v32_v9 = vld [vmem:[#allocation2 + $0x10] sm:$0xff]  ;;  %v50_v11 = vld [vmem:[#allocation2 + $0xa0] sm:$0xff] }
  0x16   :  { %v213_v8 = vpack.c.bf16 %v49_v6, %v48_v5  ;;  %v33_v10 = vld [vmem:[#allocation2 + $0x18] sm:$0xff]  ;;  %210 = vmatprep.subr.bf16.mxu0 %v209_v3  ;;  %v51_v12 = vld [vmem:[#allocation2 + $0xa8] sm:$0xff]  ;;  %v34_v15 = vld [vmem:[#allocation2 + $0x20] sm:$0xff] }
  0x17   :  { %212 = vmatpush3.bf16.msra.mxu0 %v211_v7  ;;  %v215_v13 = vpack.c.bf16 %v33_v10, %v32_v9  ;;  %v217_v14 = vpack.c.bf16 %v51_v12, %v50_v11  ;;  %v35_v16 = vld [vmem:[#allocation2 + $0x28] sm:$0xff]  ;;  %v52_v17 = vld [vmem:[#allocation2 + $0xb0] sm:$0xff]  ;;  %v53_v18 = vld [vmem:[#allocation2 + $0xb8] sm:$0xff] }
  0x18   :  { %214 = vmatprep.subr.bf16.mxu0 %v213_v8  ;;  %v219_v19 = vpack.c.bf16 %v35_v16, %v34_v15  ;;  %v221_v20 = vpack.c.bf16 %v53_v18, %v52_v17  ;;  %v36_v21 = vld [vmem:[#allocation2 + $0x30] sm:$0xff]  ;;  %v37_v22 = vld [vmem:[#allocation2 + $0x38] sm:$0xff]  ;;  %v54_v23 = vld [vmem:[#allocation2 + $0xc0] sm:$0xff] }
  0x19   :  { %v55_v24 = vld [vmem:[#allocation2 + $0xc8] sm:$0xff]  ;;  %v223_v25 = vpack.c.bf16 %v37_v22, %v36_v21  ;;  %v250_v26 = vld.sshfl [vmem:[%s351_s0] sm:$0xff pattern:$0x76325410]  ;;  %v56_v31 = vld [vmem:[#allocation2 + $0xd0] sm:$0xff] }
  0x1a   :  { %v251_v27 = vld.sshfl [vmem:[%s351_s0 + $0x8] sm:$0xff pattern:$0x76325410]  ;;  %v225_v28 = vpack.c.bf16 %v55_v24, %v54_v23  ;;  %v38_v29 = vld [vmem:[#allocation2 + $0x40] sm:$0xff]  ;;  %v57_v32 = vld [vmem:[#allocation2 + $0xd8] sm:$0xff] }
  0x1b   :  { %216 = vmatpush3.bf16.msra.mxu0 %v215_v13  ;;  %v39_v30 = vld [vmem:[#allocation2 + $0x48] sm:$0xff]  ;;  %v83_v34 = vcombine.high %v250_v26, %v251_v27  ;;  %v229_v35 = vpack.c.bf16 %v57_v32, %v56_v31  ;;  %v40_v36 = vld [vmem:[#allocation2 + $0x50] sm:$0xff]  ;;  %v41_v37 = vld [vmem:[#allocation2 + $0x58] sm:$0xff]  ;;  %v82_v51 = vcombine.low %v250_v26, %v251_v27 }
  0x1c   :  { %218 = vmatprep.subr.bf16.mxu0 %v217_v14  ;;  %v227_v33 = vpack.c.bf16 %v39_v30, %v38_v29  ;;  %v58_v38 = vld [vmem:[#allocation2 + $0xe0] sm:$0xff]  ;;  %v59_v39 = vld [vmem:[#allocation2 + $0xe8] sm:$0xff]  ;;  %v231_v40 = vpack.c.bf16 %v41_v37, %v40_v36  ;;  %v60_v44 = vld [vmem:[#allocation2 + $0xf0] sm:$0xff] }
  0x1d   :  { %150 = vmatprep.mubr.f32.mxu0 %v83_v34  ;;  %v233_v41 = vpack.c.bf16 %v59_v39, %v58_v38  ;;  %v42_v42 = vld [vmem:[#allocation2 + $0x60] sm:$0xff]  ;;  %v43_v43 = vld [vmem:[#allocation2 + $0x68] sm:$0xff]  ;;  %v61_v45 = vld [vmem:[#allocation2 + $0xf8] sm:$0xff] }
  0x1e   :  { %v235_v46 = vpack.c.bf16 %v43_v43, %v42_v42  ;;  %v237_v47 = vpack.c.bf16 %v61_v45, %v60_v44  ;;  %v44_v48 = vld [vmem:[#allocation2 + $0x70] sm:$0xff]  ;;  %v45_v49 = vld [vmem:[#allocation2 + $0x78] sm:$0xff] }
  0x1f   :  { %220 = vmatpush3.bf16.msra.mxu0 %v219_v19  ;;  %v239_v50 = vpack.c.bf16 %v45_v49, %v44_v48 }
  0x20   :  { %222 = vmatprep.subr.bf16.mxu0 %v221_v20 }
  0x23   :  { %224 = vmatpush3.bf16.msra.mxu0 %v223_v25 }
  0x24   :  { %226 = vmatprep.subr.bf16.mxu0 %v225_v28 }
  0x27   :  { %228 = vmatpush3.bf16.msra.mxu0 %v227_v33 }
  0x28   :  { %230 = vmatprep.subr.bf16.mxu0 %v229_v35 }
  0x2b   :  { %232 = vmatpush3.bf16.msra.mxu0 %v231_v40 }
  0x2c   :  { %234 = vmatprep.subr.bf16.mxu0 %v233_v41 }
  0x2f   :  { %236 = vmatpush3.bf16.msra.mxu0 %v235_v46 }
  0x30   :  { %238 = vmatprep.subr.bf16.mxu0 %v237_v47 }
  0x33   :  { %240 = vmatpush3.bf16.msra.mxu0 %v239_v50 }
  0x36   :  { %151 = vmatmul.mubr.f32.vlgmr.msra.gmra.mrb[0].mxu0 %v82_v51 }
 0x109   :  { %v206_v52 = vpop.f32.mrb[0].mxu0 }
 0x10a   :  { %v207_v53 = vpop.f32.mrb[1].mxu0 }
 0x10b   :  { %v208_v54 = vadd.f32 %v207_v53, %v206_v52 }
 0x10d   :  { %156 = vst [vmem:[#allocation5] sm:$0xff] %v208_v54 }
 0x10e   :  { %161 = vsyncadd [#allocation4], 96  ;;  %s303_s0 = smov [#allocation5]  }
 0x10f   :  { %s162_s26 = sshll.u32 %s303_s0, 4  ;;  %s163_s26 = int_to_ptr.vmem [resolvable:$true] %s162_s26 }
 0x110   :  { %s274_s27 = scalar_lea.vmem %s163_s26, 32  ;;  %s278_s28 = scalar_lea.vmem %s163_s26, 128 }
 0x111   :  { %p275_p8 = scmp.ne.s32.totalorder %s163_s26, %s274_s27  ;;  %p279_p9 = scmp.lt.s32.totalorder %s163_s26, %s163_s26 }
 0x112   :  { %p280_p10 = scmp.lt.s32.totalorder %s278_s28, %s274_s27 }
 0x114   :  { %p281_p11 = por %p280_p10, %p279_p9 }
 0x116   :  { %p282_p12 = pnand %p281_p11, %p275_p8 }
 0x118   :  { %285 = shalt.err (!%p282_p12)
}
 0x119   :  { %s286_s3 = scalar_lea.hbm %s353_s2, 32 }
 0x11a   :  { %p287_p13 = scmp.ne.s32.totalorder %s353_s2, %s286_s3  ;;  %p290_p0 = scmp.lt.u32.totalorder %s286_s3, %s353_s2 }
 0x11c   :  { %p292_p1 = pnand %p290_p0, %p287_p13 }
 0x11e   :  { %295 = shalt.err (!%p292_p1)
}
 0x11f   :  { %s304_s8 = smov 32   ;;  %s305_s9 = smov 2  }
 0x120   :  { %168 = dma.vmem_to_hbm [thread:$0]  %s163_s26, 32, %s353_s2, [#allocation4], %s304_s8, %s304_s8, %s305_s9  }
 0x121   :  { %298 = dma.done.wait [#allocation4], 128  }
 0x122   :  { %299 = vsyncadd [#allocation4], 4294967168 }
 0x123   :  { %172 = vsyncpa [#allocation3], 1 }
 0x124   :  { %173 = vsyncpa [#allocation4], 1 }

</bundles_post_ra>
